<compile_context>
chip_gen: v7x
topology: tpu7x:2x2x1
jax: 0.10.0
libtpu: 0.0.40
codegen_flags: <defaults>
</compile_context>

<pallas_src>
import jax
import jax.numpy as jnp
from jax.experimental import pallas as pl
from jax.experimental.pallas import tpu as pltpu


def _eeg_depth_attention_kernel(w_ref, b_ref, x_ref, o_ref):
    # w_ref: (K,) f32 SMEM — Conv2d(1, 1, (K, 1)) taps (PyTorch weight[0, 0, :, 0])
    # b_ref: (1,) f32 SMEM — conv bias
    # x_ref, o_ref: (BN, D, C, TW) VMEM blocks (W/time is the lane axis)
    BN, D, C, TW = x_ref.shape
    K = w_ref.shape[0]
    pad = K // 2

    # AdaptiveAvgPool2d((1, W)) with output width == input width == mean over the
    # EEG-channel axis.  Accumulate in f32 straight off the ref (no full-tile
    # upcast copy) and squeeze the dead channel axis -> sublane-dense (BN, D, TW).
    pooled = jnp.mean(x_ref[...], axis=2, dtype=jnp.float32)          # (BN, D, TW)

    # Conv2d(1, 1, (K, 1), padding=(K//2, 0)): zero-padded K-tap FIR along the
    # depth axis, applied independently per time sample (kernel width is 1).
    p_pad = jnp.pad(pooled, ((0, 0), (pad, pad), (0, 0)))             # (BN, D+2p, TW)
    y = jnp.full((BN, D, TW), b_ref[0], jnp.float32)
    for j in range(K):                                                # K static & small -> unrolled
        y = y + w_ref[j] * p_pad[:, j:j + D, :]

    # Softmax over the depth axis (PyTorch Softmax(dim=-2) after the transpose),
    # fused with the (* C) scale; one exact EUP reciprocal instead of D divides.
    m = jnp.max(y, axis=1, keepdims=True)                             # (BN, 1, TW)
    e = jnp.exp(y - m)
    s = jnp.sum(e, axis=1, keepdims=True)
    gate = e * (pl.reciprocal(s, approx=False) * jnp.float32(C))      # (BN, D, TW)

    # out = gate * x, broadcast over the EEG-channel axis.  For bf16 inputs keep
    # the big multiply in bf16 (v6e/v7x bf16 VPU).
    g = gate[:, :, None, :]                                           # (BN, D, 1, TW)
    if x_ref.dtype == jnp.bfloat16:
        # TODO(synk): on v5e (no bf16 VALU) an f32 gate would be marginally better.
        g = g.astype(jnp.bfloat16)
    o_ref[...] = (x_ref[...] * g).astype(o_ref.dtype)


def _vmem_capacity_bytes():
    """Per-TensorCore VMEM capacity; conservative (v7x = 64 MiB) if unknown."""
    try:
        return int(pltpu.get_tpu_info().vmem_capacity_bytes)
    except Exception:
        return 64 << 20


def _block_vmem_bytes(bn, D, C, tw, itemsize, K):
    """Estimated per-step VMEM: double-buffered in+out blocks + f32 intermediates."""
    io = 2 * 2 * bn * D * C * tw * itemsize           # in + out, double-buffered
    prod = bn * D * C * tw * 4                        # f32 gating product temporary
    small = 6 * bn * (D + 2 * (K // 2)) * tw * 4      # pooled / padded / y / e / gate
    return io + prod + small


def _pick_blocks(N, D, C, W, itemsize, K, budget_bytes,
                 min_steps=8, min_payload=1 << 20):
    """Pick (batch_block, time_block): lane-aligned, big enough to amortize the
    ~0.35us/step overhead, small enough for the VMEM budget, and keeping enough
    grid steps for dual-TC (v7x) sharding."""
    if W <= 128:
        tw = W                                        # full (possibly lane-masked) time axis
    else:
        tw = 128
        for cand in (8192, 4096, 2048, 1024, 512, 256):
            if cand <= W and _block_vmem_bytes(1, D, C, cand, itemsize, K) <= budget_bytes:
                tw = cand
                break
    wt = pl.cdiv(W, tw)

    bn = 1
    for cand in range(2, N + 1):
        if _block_vmem_bytes(cand, D, C, tw, itemsize, K) > budget_bytes:
            break
        payload_now = bn * D * C * tw * itemsize
        if payload_now >= min_payload and pl.cdiv(N, cand) * wt < min_steps:
            break                                     # keep >= min_steps grid steps (v7x 2 TCs)
        bn = cand
    return bn, tw


def eeg_depth_attention(x, conv_w, conv_b, *, time_tile=None, batch_tile=None,
                        donate_x=False):
    """Fused EEGDepthAttention forward.

    x:      (N, D, C, W) — batch, depth maps, EEG channels, time samples
    conv_w: (K,) or (1, 1, K, 1) — PyTorch conv.weight
    conv_b: ()            — PyTorch conv.bias[0]
    donate_x: alias the output onto x's buffer (x must be donatable).
    """
    N, D, C, W = x.shape
    w = jnp.reshape(conv_w, (-1,)).astype(jnp.float32)
    K = int(w.shape[0])
    # TODO(synk): even kernel sizes (k % 2 == 0) break the PyTorch module's own
    # broadcast (output depth != D), so only the odd-k case is implemented.
    assert K % 2 == 1, "kernel size k must be odd"
    b = jnp.reshape(conv_b, (1,)).astype(jnp.float32)

    cap = _vmem_capacity_bytes()
    budget = cap // 3                                  # ~21 MiB v7x, ~42 MiB v5e/v6e
    bn, tw = _pick_blocks(N, D, C, W, x.dtype.itemsize, K, budget)
    if time_tile is not None:
        assert time_tile == W or (time_tile % 128 == 0 and time_tile <= W), (
            "time_tile must be the full W or a multiple of 128 (lane-dense)")
        tw = time_tile
    if batch_tile is not None:
        bn = max(1, min(int(batch_tile), N))

    grid = (pl.cdiv(N, bn), pl.cdiv(W, tw))            # cdiv: masked tail, nothing dropped

    flops = N * W * (4 * D * C + (2 * K + 6) * D)
    bytes_accessed = 2 * N * D * C * W * x.dtype.itemsize + (K + 1) * 4

    return pl.pallas_call(
        _eeg_depth_attention_kernel,
        out_shape=jax.ShapeDtypeStruct((N, D, C, W), x.dtype),
        grid=grid,
        in_specs=[
            pl.BlockSpec(memory_space=pltpu.MemorySpace.SMEM),         # conv taps
            pl.BlockSpec(memory_space=pltpu.MemorySpace.SMEM),         # conv bias
            pl.BlockSpec((bn, D, C, tw), lambda n, t: (n, 0, 0, t)),   # x block
        ],
        out_specs=pl.BlockSpec((bn, D, C, tw), lambda n, t: (n, 0, 0, t)),
        compiler_params=pltpu.CompilerParams(
            dimension_semantics=("parallel", "parallel"),
            vmem_limit_bytes=min(cap // 2, 64 << 20),
        ),
        cost_estimate=pl.CostEstimate(
            flops=flops,
            transcendentals=N * D * W,
            bytes_accessed=bytes_accessed,
        ),
        input_output_aliases={2: 0} if donate_x else {},
    )(w, b, x)


def _reference(x, conv_w, conv_b):
    """Plain-JAX reference of the PyTorch EEGDepthAttention forward."""
    N, D, C, W = x.shape
    w = jnp.reshape(conv_w, (-1,))
    k = w.shape[0]
    pad = k // 2
    pooled = jnp.mean(x.astype(jnp.float32), axis=2)                  # (N, D, W)
    p_pad = jnp.pad(pooled, ((0, 0), (pad, pad), (0, 0)))
    y = conv_b + sum(w[j] * p_pad[:, j:j + D, :] for j in range(k))
    attn = jax.nn.softmax(y, axis=1)                                  # softmax over depth
    return (attn[:, :, None, :] * C * x.astype(jnp.float32)).astype(x.dtype)


if __name__ == "__main__":
    key = jax.random.PRNGKey(0)
    kx, kw, kb = jax.random.split(key, 3)

    # Small, module-consistent shapes: batch=2, depth maps=8, EEG channels=16,
    # time samples=128 (lane-aligned), learnable kernel size k=7.
    N, D, C, W, K = 2, 8, 16, 128, 7

    x = jax.random.normal(kx, (N, D, C, W), dtype=jnp.float32)
    bound = 1.0 / (K ** 0.5)  # PyTorch Conv2d default init scale (fan_in = 1*K*1)
    conv_w = jax.random.uniform(kw, (K,), jnp.float32, -bound, bound)
    conv_b = jax.random.uniform(kb, (), jnp.float32, -bound, bound)

    out = eeg_depth_attention(x, conv_w, conv_b)
    out = jax.block_until_ready(out)

    ref = _reference(x, conv_w, conv_b)
    assert out.shape == x.shape and out.dtype == x.dtype
    max_err = float(jnp.max(jnp.abs(out - ref)))
    assert jnp.allclose(out, ref, atol=1e-5, rtol=1e-5), f"max abs err {max_err}"

    print("KERNEL_OK")
</pallas_src>

<mosaic_0001>
module attributes {stable_mosaic.version = 11 : i64} {
  func.func @_eeg_depth_attention_kernel(%arg0: i32, %arg1: i32, %arg2: memref<7xf32, #tpu.memory_space<smem>>, %arg3: memref<1xf32, #tpu.memory_space<smem>>, %arg4: memref<2x8x16x128xf32, #tpu.memory_space<vmem>>, %arg5: memref<2x8x16x128xf32, #tpu.memory_space<vmem>>) attributes {dimension_semantics = [#tpu.dimension_semantics<parallel>, #tpu.dimension_semantics<parallel>], iteration_bounds = array<i64: 1, 1>, scalar_prefetch = 0 : i64, scratch_operands = 0 : i64, tpu.core_type = #tpu.core_type<tc>, window_params = [{transform_indices = @transform_0, window_bounds = array<i64: 7>}, {transform_indices = @transform_1, window_bounds = array<i64: 1>}, {transform_indices = @transform_2, window_bounds = array<i64: 2, 8, 16, 128>}, {transform_indices = @transform_3, window_bounds = array<i64: 2, 8, 16, 128>}]} {
    %c0 = arith.constant 0 : index
    %c0_0 = arith.constant 0 : index
    %c0_1 = arith.constant 0 : index
    %c0_2 = arith.constant 0 : index
    %0 = vector.load %arg4[%c0, %c0_0, %c0_1, %c0_2] : memref<2x8x16x128xf32, #tpu.memory_space<vmem>>, vector<2x8x16x128xf32>
    %cst = arith.constant dense<0.000000e+00> : vector<2x8x128xf32>
    %1 = vector.multi_reduction <add>, %0, %cst [2] : vector<2x8x16x128xf32> to vector<2x8x128xf32>
    %cst_3 = arith.constant 1.600000e+01 : f32
    %2 = vector.broadcast %cst_3 : f32 to vector<2x8x128xf32>
    %3 = arith.divf %1, %2 : vector<2x8x128xf32>
    %c0_i32 = arith.constant 0 : i32
    %4 = arith.sitofp %c0_i32 : i32 to f32
    %5 = vector.broadcast %4 : f32 to vector<2x3x128xf32>
    %6 = tpu.concatenate %5, %3 in 1 : vector<2x3x128xf32>, vector<2x8x128xf32> -> vector<2x11x128xf32>
    %7 = vector.broadcast %4 : f32 to vector<2x3x128xf32>
    %8 = tpu.concatenate %6, %7 in 1 : vector<2x11x128xf32>, vector<2x3x128xf32> -> vector<2x14x128xf32>
    %c0_4 = arith.constant 0 : index
    %9 = memref.load %arg3[%c0_4] : memref<1xf32, #tpu.memory_space<smem>>
    %10 = vector.broadcast %9 : f32 to vector<2x8x128xf32>
    %c0_5 = arith.constant 0 : index
    %11 = memref.load %arg2[%c0_5] : memref<7xf32, #tpu.memory_space<smem>>
    %12 = vector.extract_strided_slice %8 {offsets = [0, 0, 0], sizes = [2, 8, 128], strides = [1, 1, 1]} : vector<2x14x128xf32> to vector<2x8x128xf32>
    %13 = vector.broadcast %11 : f32 to vector<2x8x128xf32>
    %14 = arith.mulf %13, %12 : vector<2x8x128xf32>
    %15 = arith.addf %10, %14 : vector<2x8x128xf32>
    %c1 = arith.constant 1 : index
    %16 = memref.load %arg2[%c1] : memref<7xf32, #tpu.memory_space<smem>>
    %17 = vector.extract_strided_slice %8 {offsets = [0, 1, 0], sizes = [2, 8, 128], strides = [1, 1, 1]} : vector<2x14x128xf32> to vector<2x8x128xf32>
    %18 = vector.broadcast %16 : f32 to vector<2x8x128xf32>
    %19 = arith.mulf %18, %17 : vector<2x8x128xf32>
    %20 = arith.addf %15, %19 : vector<2x8x128xf32>
    %c2 = arith.constant 2 : index
    %21 = memref.load %arg2[%c2] : memref<7xf32, #tpu.memory_space<smem>>
    %22 = vector.extract_strided_slice %8 {offsets = [0, 2, 0], sizes = [2, 8, 128], strides = [1, 1, 1]} : vector<2x14x128xf32> to vector<2x8x128xf32>
    %23 = vector.broadcast %21 : f32 to vector<2x8x128xf32>
    %24 = arith.mulf %23, %22 : vector<2x8x128xf32>
    %25 = arith.addf %20, %24 : vector<2x8x128xf32>
    %c3 = arith.constant 3 : index
    %26 = memref.load %arg2[%c3] : memref<7xf32, #tpu.memory_space<smem>>
    %27 = vector.extract_strided_slice %8 {offsets = [0, 3, 0], sizes = [2, 8, 128], strides = [1, 1, 1]} : vector<2x14x128xf32> to vector<2x8x128xf32>
    %28 = vector.broadcast %26 : f32 to vector<2x8x128xf32>
    %29 = arith.mulf %28, %27 : vector<2x8x128xf32>
    %30 = arith.addf %25, %29 : vector<2x8x128xf32>
    %c4 = arith.constant 4 : index
    %31 = memref.load %arg2[%c4] : memref<7xf32, #tpu.memory_space<smem>>
    %32 = vector.extract_strided_slice %8 {offsets = [0, 4, 0], sizes = [2, 8, 128], strides = [1, 1, 1]} : vector<2x14x128xf32> to vector<2x8x128xf32>
    %33 = vector.broadcast %31 : f32 to vector<2x8x128xf32>
    %34 = arith.mulf %33, %32 : vector<2x8x128xf32>
    %35 = arith.addf %30, %34 : vector<2x8x128xf32>
    %c5 = arith.constant 5 : index
    %36 = memref.load %arg2[%c5] : memref<7xf32, #tpu.memory_space<smem>>
    %37 = vector.extract_strided_slice %8 {offsets = [0, 5, 0], sizes = [2, 8, 128], strides = [1, 1, 1]} : vector<2x14x128xf32> to vector<2x8x128xf32>
    %38 = vector.broadcast %36 : f32 to vector<2x8x128xf32>
    %39 = arith.mulf %38, %37 : vector<2x8x128xf32>
    %40 = arith.addf %35, %39 : vector<2x8x128xf32>
    %c6 = arith.constant 6 : index
    %41 = memref.load %arg2[%c6] : memref<7xf32, #tpu.memory_space<smem>>
    %42 = vector.extract_strided_slice %8 {offsets = [0, 6, 0], sizes = [2, 8, 128], strides = [1, 1, 1]} : vector<2x14x128xf32> to vector<2x8x128xf32>
    %43 = vector.broadcast %41 : f32 to vector<2x8x128xf32>
    %44 = arith.mulf %43, %42 : vector<2x8x128xf32>
    %45 = arith.addf %40, %44 : vector<2x8x128xf32>
    %cst_6 = arith.constant dense<0xFF800000> : vector<2x128xf32>
    %46 = vector.multi_reduction <maximumf>, %45, %cst_6 [1] : vector<2x8x128xf32> to vector<2x128xf32>
    %47 = vector.shape_cast %46 : vector<2x128xf32> to vector<2x1x128xf32>
    %48 = vector.broadcast %47 : vector<2x1x128xf32> to vector<2x8x128xf32>
    %49 = arith.subf %45, %48 : vector<2x8x128xf32>
    %50 = math.exp %49 : vector<2x8x128xf32>
    %cst_7 = arith.constant dense<0.000000e+00> : vector<2x128xf32>
    %51 = vector.multi_reduction <add>, %50, %cst_7 [1] : vector<2x8x128xf32> to vector<2x128xf32>
    %52 = vector.shape_cast %51 : vector<2x128xf32> to vector<2x1x128xf32>
    %53 = tpu.reciprocal %52 : vector<2x1x128xf32> -> vector<2x1x128xf32>
    %cst_8 = arith.constant 1.600000e+01 : f32
    %54 = vector.broadcast %cst_8 : f32 to vector<2x1x128xf32>
    %55 = arith.mulf %53, %54 : vector<2x1x128xf32>
    %56 = vector.broadcast %55 : vector<2x1x128xf32> to vector<2x8x128xf32>
    %57 = arith.mulf %50, %56 : vector<2x8x128xf32>
    %58 = vector.shape_cast %57 : vector<2x8x128xf32> to vector<2x8x1x128xf32>
    %c0_9 = arith.constant 0 : index
    %c0_10 = arith.constant 0 : index
    %c0_11 = arith.constant 0 : index
    %c0_12 = arith.constant 0 : index
    %59 = vector.load %arg4[%c0_9, %c0_10, %c0_11, %c0_12] : memref<2x8x16x128xf32, #tpu.memory_space<vmem>>, vector<2x8x16x128xf32>
    %60 = vector.broadcast %58 : vector<2x8x1x128xf32> to vector<2x8x16x128xf32>
    %61 = arith.mulf %59, %60 : vector<2x8x16x128xf32>
    %c0_13 = arith.constant 0 : index
    %c0_14 = arith.constant 0 : index
    %c0_15 = arith.constant 0 : index
    %c0_16 = arith.constant 0 : index
    %62 = vector.load %arg5[%c0_13, %c0_14, %c0_15, %c0_16] : memref<2x8x16x128xf32, #tpu.memory_space<vmem>>, vector<2x8x16x128xf32>
    tpu.vector_store %arg5[%c0_13, %c0_14, %c0_15, %c0_16], %61 {strides = array<i32>} : memref<2x8x16x128xf32, #tpu.memory_space<vmem>>, vector<2x8x16x128xf32>,
    return
  }
  func.func @transform_0(%arg0: i32, %arg1: i32) -> i32 {
    %c0_i32 = arith.constant 0 : i32
    %c0_i32_0 = arith.constant 0 : i32
    return %c0_i32 : i32
  }
  func.func @transform_1(%arg0: i32, %arg1: i32) -> i32 {
    %c0_i32 = arith.constant 0 : i32
    %c0_i32_0 = arith.constant 0 : i32
    return %c0_i32 : i32
  }
  func.func @transform_2(%arg0: i32, %arg1: i32) -> (i32, i32, i32, i32) {
    %c0_i32 = arith.constant 0 : i32
    %c0_i32_0 = arith.constant 0 : i32
    %c0_i32_1 = arith.constant 0 : i32
    return %arg0, %c0_i32, %c0_i32_0, %arg1 : i32, i32, i32, i32
  }
  func.func @transform_3(%arg0: i32, %arg1: i32) -> (i32, i32, i32, i32) {
    %c0_i32 = arith.constant 0 : i32
    %c0_i32_0 = arith.constant 0 : i32
    %c0_i32_1 = arith.constant 0 : i32
    return %arg0, %c0_i32, %c0_i32_0, %arg1 : i32, i32, i32, i32
  }
}

</mosaic_0001>

<bundles_post_ra>
// kernel: tpu_custom_call.1
= control target key start
LH: loop header
LB: loop body
LE: loop exit
PB: predicated region body
PF: predicated region fallthrough
CT: control target
= control target key end

     0   :  { %9 = vsyncpa [#allocation6], 0  ;;  %s1070_s0 = inlined_call_operand.vmem [shape: f32[7], index: 0, kind: input, shape index: {}]   ;;  %s1071_s1 = inlined_call_operand.<no memory space> [shape: f32[1], index: 1, kind: input, shape index: {}]   ;;  %s1072_s2 = inlined_call_operand.hbm [shape: f32[2,8,16,128], index: 2, kind: input, shape index: {}]   ;;  %s1073_s3 = inlined_call_operand.hbm [shape: f32[2,8,16,128], index: 3, kind: output, shape index: {}]  }
   0x1   :  { %10 = vsyncpa [#allocation4], 0 }
   0x2   :  { %11 = vsyncpa [#allocation5], 0  ;;  %s18_s14 = sshll.u32 %s1070_s0, 4  ;;  %s19_s14 = int_to_ptr.vmem [resolvable:$true] %s18_s14 }
   0x3   :  { %s698_s15 = scalar_lea.vmem %s19_s14, 16  ;;  %p703_p1 = scmp.lt.s32.totalorder %s19_s14, %s19_s14 }
   0x4   :  { %p699_p0 = scmp.ne.s32.totalorder %s19_s14, %s698_s15  ;;  %p704_p2 = scmp.lt.s32.totalorder %s698_s15, %s698_s15 }
   0x6   :  { %p705_p3 = por %p704_p2, %p703_p1 }
   0x8   :  { %p706_p4 = pnand %p705_p3, %p699_p0 }
   0xa   :  { %709 = shalt.err (!%p706_p4)
}
   0xb   :  { %s760_s16 = smov [#allocation3]   ;;  %s761_s17 = smov [#allocation7]  }
   0xc   :  { %21 = dma.vmem_to_smem %s19_s14, 16, %s760_s16, [#allocation6]  }
   0xd   :  { %s29_s18 = sshll.u32 %s761_s17, 4  ;;  %s710_s21 = scalar_lea.hbm %s1072_s2, 4096  ;;  %s30_s18 = int_to_ptr.vmem [resolvable:$true] %s29_s18 }
   0xe   :  { %p711_p5 = scmp.ne.s32.totalorder %s1072_s2, %s710_s21  ;;  %p714_p6 = scmp.lt.u32.totalorder %s710_s21, %s1072_s2 }
  0x10   :  { %p716_p7 = pnand %p714_p6, %p711_p5 }
  0x12   :  { %719 = shalt.err (!%p716_p7)
}
  0x13   :  { %s720_s25 = scalar_lea.vmem %s30_s18, 4096  ;;  %p725_p9 = scmp.lt.s32.totalorder %s30_s18, %s30_s18 }
  0x14   :  { %p721_p8 = scmp.ne.s32.totalorder %s30_s18, %s720_s25  ;;  %p726_p10 = scmp.lt.s32.totalorder %s720_s25, %s720_s25 }
  0x16   :  { %p727_p11 = por %p726_p10, %p725_p9 }
  0x18   :  { %p728_p12 = pnand %p727_p11, %p721_p8 }
  0x1a   :  { %731 = shalt.err (!%p728_p12)
}
  0x1b   :  { %s762_s26 = smov 128   ;;  %s763_s27 = smov 8  }
  0x1c   :  { %35 = dma.hbm_to_vmem [thread:$0]  %s1072_s2, 4096, %s30_s18, [#allocation4], %s762_s26, %s762_s26, %s763_s27  }
  0x1d   :  { %754 = dma.done.wait [#allocation6], 16  }
  0x1e   :  { %755 = vsyncadd [#allocation6], 4294967280 }
  0x1f   :  { %756 = dma.done.wait [#allocation4], 4096  }
  0x20   :  { %757 = vsyncadd [#allocation4], 4294963200 }
  0x21   :  { %42 = sfence }
  0x22   :  { %v804_v0 = vld [vmem:[#allocation7] sm:$0xff]  ;;  %v806_v1 = vld [vmem:[#allocation7 + $0x8] sm:$0xff]  ;;  %v808_v2 = vld [vmem:[#allocation7 + $0x10] sm:$0xff]  ;;  %s856_s2 = sld [smem:[#allocation3]]  ;;  %vm220_vm0 = vcmask 1044484   ;;  %s862_s30 = sld [smem:[#allocation3 + $0x1]] }
  0x23   :  { %v810_v3 = vld [vmem:[#allocation7 + $0x18] sm:$0xff]  ;;  %v812_v4 = vld [vmem:[#allocation7 + $0x20] sm:$0xff]  ;;  %v814_v5 = vld [vmem:[#allocation7 + $0x28] sm:$0xff]  ;;  %v75_v6 = vadd.f32 %v806_v1, %v804_v0  ;;  %vm222_vm1 = vcmask 1045509   ;;  %vm224_vm2 = vcmask 1046534   ;;  %s870_s4 = sld [smem:[#allocation3 + $0x2]] }
  0x24   :  { %v818_v7 = vld [vmem:[#allocation7 + $0x30] sm:$0xff]  ;;  %v820_v8 = vld [vmem:[#allocation7 + $0x38] sm:$0xff]  ;;  %v822_v9 = vld [vmem:[#allocation7 + $0x40] sm:$0xff]  ;;  %v82_v10 = vadd.f32 %v810_v3, %v808_v2  ;;  %v89_v11 = vadd.f32 %v814_v5, %v812_v4  ;;  %vm226_vm3 = vcmask 1047559   ;;  %vm228_vm4 = vcmask 1041409   ;;  %s879_s5 = sld [smem:[#allocation3 + $0x3]] }
  0x25   :  { %v828_v12 = vld [vmem:[#allocation7 + $0x48] sm:$0xff]  ;;  %v830_v13 = vld [vmem:[#allocation7 + $0x50] sm:$0xff]  ;;  %v832_v14 = vld [vmem:[#allocation7 + $0x58] sm:$0xff]  ;;  %v76_v15 = vrot.slane %v75_v6, 4  ;;  %v96_v16 = vadd.f32 %v820_v8, %v818_v7  ;;  %vm230_vm5 = vcmask 1042434   ;;  %vm242_vm6 = vcmask 1042432  }
  0x26   :  { %v836_v17 = vld [vmem:[#allocation7 + $0x60] sm:$0xff]  ;;  %v838_v18 = vld [vmem:[#allocation7 + $0x68] sm:$0xff]  ;;  %v840_v19 = vld [vmem:[#allocation7 + $0x70] sm:$0xff]  ;;  %v83_v20 = vrot.slane %v82_v10, 4  ;;  %v90_v21 = vrot.slane %v89_v11, 4  ;;  %v103_v22 = vadd.f32 %v828_v12, %v822_v9  ;;  %v110_v23 = vadd.f32 %v832_v14, %v830_v13  ;;  %s681_s8 = sld [smem:[#allocation3 + $0x4]] }
  0x27   :  { %v846_v24 = vld [vmem:[#allocation7 + $0x78] sm:$0xff]  ;;  %v77_v25 = vadd.f32 %v76_v15, %v75_v6  ;;  %v97_v26 = vrot.slane %v96_v16, 4  ;;  %v117_v27 = vadd.f32 %v838_v18, %v836_v17  ;;  %v852_v60 = vld [vmem:[#allocation7 + $0xd0] sm:$0xff]  ;;  %v860_v15 = vld [vmem:[#allocation7 + $0xe8] sm:$0xff]  ;;  %s682_s9 = sld [smem:[#allocation3 + $0x5]]  ;;  %vm265_vm7 = vcmask 1046528  }
  0x28   :  { %v84_v28 = vadd.f32 %v83_v20, %v82_v10  ;;  %v91_v29 = vadd.f32 %v90_v21, %v89_v11  ;;  %v104_v30 = vrot.slane %v103_v22, 4  ;;  %v111_v31 = vrot.slane %v110_v23, 4  ;;  %1084 = vst [vmem:[#allocation12_spill] sm:$0xff] %v852_v60  ;;  %v854_v61 = vld [vmem:[#allocation7 + $0xd8] sm:$0xff]  ;;  %v858_v11 = vld [vmem:[#allocation7 + $0xe0] sm:$0xff]  ;;  %1087 = vst [vmem:[#allocation15_spill] sm:$0xff] %v860_v15 }
  0x29   :  { %v78_v32 = vrot.slane %v77_v25, 2  ;;  %v98_v33 = vadd.f32 %v97_v26, %v96_v16  ;;  %v118_v34 = vrot.slane %v117_v27, 4  ;;  %v124_v35 = vadd.f32 %v846_v24, %v840_v19  ;;  %1085 = vst [vmem:[#allocation13_spill] sm:$0xff] %v854_v61  ;;  %1086 = vst [vmem:[#allocation14_spill] sm:$0xff] %v858_v11  ;;  %v866_v26 = vld [vmem:[#allocation7 + $0xf8] sm:$0xff]  ;;  %s683_s12 = sld [smem:[#allocation3 + $0x6]] }
  0x2a   :  { %v85_v36 = vrot.slane %v84_v28, 2  ;;  %v92_v37 = vrot.slane %v91_v29, 2  ;;  %v105_v38 = vadd.f32 %v104_v30, %v103_v22  ;;  %v112_v39 = vadd.f32 %v111_v31, %v110_v23  ;;  %1089 = vst [vmem:[#allocation17_spill] sm:$0xff] %v866_v26 }
  0x2b   :  { %v79_v40 = vadd.f32 %v78_v32, %v77_v25  ;;  %v99_v41 = vrot.slane %v98_v33, 2  ;;  %v119_v42 = vadd.f32 %v118_v34, %v117_v27  ;;  %v125_v43 = vrot.slane %v124_v35, 4  ;;  %v864_v25 = vld [vmem:[#allocation7 + $0xf0] sm:$0xff] }
  0x2c   :  { %v86_v44 = vadd.f32 %v85_v36, %v84_v28  ;;  %v93_v45 = vadd.f32 %v92_v37, %v91_v29  ;;  %v106_v46 = vrot.slane %v105_v38, 2  ;;  %v113_v47 = vrot.slane %v112_v39, 2  ;;  %1088 = vst [vmem:[#allocation16_spill] sm:$0xff] %v864_v25 }
  0x2d   :  { %v80_v48 = vrot.slane %v79_v40, 1  ;;  %v100_v49 = vadd.f32 %v99_v41, %v98_v33  ;;  %v120_v50 = vrot.slane %v119_v42, 2  ;;  %v126_v51 = vadd.f32 %v125_v43, %v124_v35 }
  0x2e   :  { %v87_v52 = vrot.slane %v86_v44, 1  ;;  %v94_v53 = vrot.slane %v93_v45, 1  ;;  %v107_v54 = vadd.f32 %v106_v46, %v105_v38  ;;  %v114_v55 = vadd.f32 %v113_v47, %v112_v39 }
  0x2f   :  { %v81_v56 = vadd.f32 %v80_v48, %v79_v40  ;;  %v101_v57 = vrot.slane %v100_v49, 1  ;;  %v121_v58 = vadd.f32 %v120_v50, %v119_v42  ;;  %v127_v59 = vrot.slane %v126_v51, 2 }
  0x30   :  { %v88_v62 = vadd.f32 %v87_v52, %v86_v44  ;;  %v95_v63 = vadd.f32 %v94_v53, %v93_v45  ;;  %v108_v6 = vrot.slane %v107_v54, 1  ;;  %v115_v10 = vrot.slane %v114_v55, 1 }
  0x31   :  { %v102_v16 = vadd.f32 %v101_v57, %v100_v49  ;;  %v122_v20 = vrot.slane %v121_v58, 1  ;;  %v128_v21 = vadd.f32 %v127_v59, %v126_v51  ;;  %v166_v29 = vadd.f32 %v854_v61, %v852_v60 }
  0x32   :  { %v109_v22 = vadd.f32 %v108_v6, %v107_v54  ;;  %v116_v23 = vadd.f32 %v115_v10, %v114_v55  ;;  %v188_v30 = vmul.f32 0.0625, %v81_v56  ;;  %v173_v31 = vadd.f32 %v860_v15, %v858_v11 }
  0x33   :  { %v123_v27 = vadd.f32 %v122_v20, %v121_v58  ;;  %v129_v28 = vrot.slane %v128_v21, 1  ;;  %v189_v32 = vmul.f32 0.0625, %v88_v62  ;;  %v190_v33 = vmul.f32 0.0625, %v95_v63 }
  0x34   :  { %v191_v35 = vmul.f32 0.0625, %v102_v16  ;;  %v180_v36 = vadd.f32 %v866_v26, %v864_v25  ;;  %v192_v37 = vmul.f32 0.0625, %v109_v22  ;;  %v193_v38 = vmul.f32 0.0625, %v116_v23 }
  0x35   :  { %v130_v34 = vadd.f32 %v129_v28, %v128_v21  ;;  %v194_v39 = vmul.f32 0.0625, %v123_v27  ;;  %v167_v40 = vrot.slane %v166_v29, 4  ;;  %v221_v42 = vsel %vm220_vm0, %v189_v32, %v188_v30 }
  0x36   :  { %v174_v43 = vrot.slane %v173_v31, 4  ;;  %v223_v44 = vsel %vm222_vm1, %v190_v33, %v221_v42  ;;  %v1075_v48 = vstv %s856_s2  ;;  %v885_v49 = vstv %s862_s30 }
  0x37   :  { %v195_v41 = vmul.f32 0.0625, %v130_v34  ;;  %v229_v45 = vsel %vm228_vm4, %v194_v39, %v193_v38  ;;  %v225_v46 = vsel %vm224_vm2, %v191_v35, %v223_v44  ;;  %v181_v50 = vrot.slane %v180_v36, 4 }
  0x38   :  { %v227_v51 = vsel %vm226_vm3, %v192_v37, %v225_v46  ;;  %v1074_v53 = vstv %s1071_s1  ;;  %v168_v54 = vadd.f32 %v167_v40, %v166_v29  ;;  %v895_v57 = vstv %s870_s4 }
  0x39   :  { %v231_v47 = vsel %vm230_vm5, %v195_v41, %v229_v45  ;;  %v243_v55 = vsel %vm242_vm6, 0.0, %v227_v51  ;;  %v175_v58 = vadd.f32 %v174_v43, %v173_v31  ;;  %v182_v16 = vadd.f32 %v181_v50, %v180_v36 }
  0x3a   :  { %v245_v52 = vsel %vm242_vm6, %v231_v47, 0.0  ;;  %v251_v59 = vmul.f32 %v1075_v48, %v243_v55  ;;  %v257_v62 = vmul.f32 %v885_v49, %v243_v55  ;;  %v278_v6 = vmul.f32 %v895_v57, %v243_v55 }
  0x3b   :  { %v258_v56 = vmul.f32 %v885_v49, %v245_v52  ;;  %v279_v10 = vmul.f32 %v895_v57, %v245_v52  ;;  %v169_v22 = vrot.slane %v168_v54, 2  ;;  %vm286_vm8 = vcmask 1045504  }
  0x3c   :  { %v253_v20 = vadd.f32 %v251_v59, %v1074_v53  ;;  %v266_v21 = vrot.slane %v257_v62, 1  ;;  %v287_v23 = vrot.slane %v278_v6, 2  ;;  %v176_v28 = vrot.slane %v175_v58, 2  ;;  %v925_v6 = vld [vmem:[#allocation7 + $0x88] sm:$0xff] }
  0x3d   :  { %v267_v63 = vrot.slane %v258_v56, 1  ;;  %v288_v27 = vrot.slane %v279_v10, 2  ;;  %v908_v30 = vstv %s879_s5  ;;  %v183_v35 = vrot.slane %v182_v16, 2 }
  0x3e   :  { %v299_v33 = vmul.f32 %v908_v30, %v243_v55  ;;  %v300_v34 = vmul.f32 %v908_v30, %v245_v52  ;;  %vm307_vm9 = vcmask 1044480   ;;  %v913_v36 = vstv %s681_s8 }
  0x3f   :  { %v268_v29 = vsel %vm265_vm7, %v266_v21, %v267_v63  ;;  %v289_v32 = vsel %vm286_vm8, %v287_v23, %v288_v27  ;;  %v170_v37 = vadd.f32 %v169_v22, %v168_v54  ;;  %v177_v41 = vadd.f32 %v176_v28, %v175_v58  ;;  %v923_v63 = vld [vmem:[#allocation7 + $0x80] sm:$0xff]  ;;  %v931_v28 = vld [vmem:[#allocation7 + $0x90] sm:$0xff] }
  0x40   :  { %v274_v31 = vadd.f32 %v268_v29, %v253_v20  ;;  %v308_v39 = vrot.slane %v299_v33, 3  ;;  %v309_v40 = vrot.slane %v300_v34, 3  ;;  %v320_v42 = vmul.f32 %v913_v36, %v243_v55  ;;  %v933_v29 = vld [vmem:[#allocation7 + $0x98] sm:$0xff]  ;;  %v937_v33 = vld [vmem:[#allocation7 + $0xa8] sm:$0xff]  ;;  %v939_v34 = vld [vmem:[#allocation7 + $0xb0] sm:$0xff] }
  0x41   :  { %v321_v43 = vmul.f32 %v913_v36, %v245_v52  ;;  %v917_v44 = vstv %s682_s9  ;;  %vm328_vm10 = vcmask 1043456   ;;  %v184_v46 = vadd.f32 %v183_v35, %v182_v16  ;;  %1090 = vst [vmem:[#allocation18_spill] sm:$0xff] %v939_v34 }
  0x42   :  { %v295_v38 = vadd.f32 %v289_v32, %v274_v31  ;;  %v310_v45 = vsel %vm307_vm9, %v308_v39, %v309_v40  ;;  %v329_v50 = vrot.slane %v320_v42, 4  ;;  %v171_v56 = vrot.slane %v170_v37, 1  ;;  %v935_v32 = vld [vmem:[#allocation7 + $0xa0] sm:$0xff]  ;;  %v944_v40 = vld [vmem:[#allocation7 + $0xb8] sm:$0xff] }
  0x43   :  { %v330_v51 = vrot.slane %v321_v43, 4  ;;  %v341_v54 = vmul.f32 %v917_v44, %v243_v55  ;;  %v178_v59 = vrot.slane %v177_v41, 1  ;;  %v342_v58 = vmul.f32 %v917_v44, %v245_v52  ;;  %1091 = vst [vmem:[#allocation19_spill] sm:$0xff] %v944_v40  ;;  %v946_v42 = vld [vmem:[#allocation7 + $0xc0] sm:$0xff] }
  0x44   :  { %v316_v47 = vadd.f32 %v310_v45, %v295_v38  ;;  %v927_v21 = vstv %s683_s12  ;;  %v185_v16 = vrot.slane %v184_v46, 1  ;;  %v172_v31 = vadd.f32 %v171_v56, %v170_v37  ;;  %v948_v37 = vld [vmem:[#allocation7 + $0xc8] sm:$0xff] }
  0x45   :  { %v331_v62 = vsel %vm328_vm10, %v329_v50, %v330_v51  ;;  %v349_v20 = vrot.slane %v341_v54, 5  ;;  %v350_v22 = vrot.slane %v342_v58, 5  ;;  %v361_v23 = vmul.f32 %v927_v21, %v243_v55 }
  0x46   :  { %v337_v10 = vadd.f32 %v331_v62, %v316_v47  ;;  %v362_v27 = vmul.f32 %v927_v21, %v245_v52  ;;  %vm369_vm11 = vcmask 1041408   ;;  %v131_v35 = vadd.f32 %v925_v6, %v923_v63 }
  0x47   :  { %v179_v38 = vadd.f32 %v178_v59, %v177_v41  ;;  %v351_v55 = vsel %vm242_vm6, %v349_v20, %v350_v22  ;;  %v370_v39 = vrot.slane %v361_v23, 6  ;;  %v186_v47 = vadd.f32 %v185_v16, %v184_v46 }
  0x48   :  { %v371_v52 = vrot.slane %v362_v27, 6  ;;  %v357_v43 = vadd.f32 %v351_v55, %v337_v10  ;;  %v132_v45 = vrot.slane %v131_v35, 4  ;;  %v138_v51 = vadd.f32 %v933_v29, %v931_v28 }
  0x49   :  { %v145_v41 = vadd.f32 %v937_v33, %v935_v32  ;;  %v152_v59 = vadd.f32 %v944_v40, %v939_v34  ;;  %v159_v62 = vadd.f32 %v948_v37, %v946_v42  ;;  %v201_v58 = vmul.f32 0.0625, %v172_v31 }
  0x4a   :  { %v372_v50 = vsel %vm369_vm11, %v370_v39, %v371_v52  ;;  %v133_v54 = vadd.f32 %v132_v45, %v131_v35  ;;  %v202_v10 = vmul.f32 0.0625, %v179_v38  ;;  %v139_v20 = vrot.slane %v138_v51, 4 }
  0x4b   :  { %v378_v56 = vadd.f32 %v372_v50, %v357_v43  ;;  %v146_v46 = vrot.slane %v145_v41, 4  ;;  %v153_v23 = vrot.slane %v152_v59, 4  ;;  %v160_v27 = vrot.slane %v159_v62, 4 }
  0x4c   :  { %v134_v22 = vrot.slane %v133_v54, 2  ;;  %v140_v55 = vadd.f32 %v139_v20, %v138_v51  ;;  %v203_v45 = vmul.f32 0.0625, %v186_v47  ;;  %v236_v50 = vsel %vm228_vm4, %v202_v10, %v201_v58 }
  0x4d   :  { %v380_v16 = vrot.slane %v378_v56, 4  ;;  %v147_v39 = vadd.f32 %v146_v46, %v145_v41  ;;  %v154_v43 = vadd.f32 %v153_v23, %v152_v59  ;;  %v161_v35 = vadd.f32 %v160_v27, %v159_v62 }
  0x4e   :  { %v135_v53 = vadd.f32 %v134_v22, %v133_v54  ;;  %v141_v48 = vrot.slane %v140_v55, 2  ;;  %v237_v41 = vsel %vm230_vm5, %v203_v45, %v236_v50  ;;  %v1092_v50 = vstv %s856_s2 }
  0x4f   :  { %v381_v52 = vmax.f32 %v378_v56, %v380_v16  ;;  %v148_v26 = vrot.slane %v147_v39, 2  ;;  %v155_v38 = vrot.slane %v154_v43, 2  ;;  %v162_v15 = vrot.slane %v161_v35, 2 }
  0x50   :  { %v136_v31 = vrot.slane %v135_v53, 1  ;;  %v142_v11 = vadd.f32 %v141_v48, %v140_v55  ;;  %v246_v16 = vsel %vm242_vm6, %v237_v41, 0.0 }
  0x51   :  { %v382_v25 = vrot.slane %v381_v52, 2  ;;  %v149_v61 = vadd.f32 %v148_v26, %v147_v39  ;;  %v156_v34 = vadd.f32 %v155_v38, %v154_v43  ;;  %v163_v51 = vadd.f32 %v162_v15, %v161_v35 }
  0x52   :  { %v137_v40 = vadd.f32 %v136_v31, %v135_v53  ;;  %v143_v54 = vrot.slane %v142_v11, 1  ;;  %v260_v55 = vmul.f32 %v885_v49, %v246_v16  ;;  %v281_v39 = vmul.f32 %v895_v57, %v246_v16 }
  0x53   :  { %v383_v60 = vmax.f32 %v381_v52, %v382_v25  ;;  %v150_v59 = vrot.slane %v149_v61, 1  ;;  %v157_v47 = vrot.slane %v156_v34, 1  ;;  %v164_v20 = vrot.slane %v163_v51, 1 }
  0x54   :  { %v144_v58 = vadd.f32 %v143_v54, %v142_v11  ;;  %v196_v46 = vmul.f32 0.0625, %v137_v40  ;;  %v302_v40 = vmul.f32 %v908_v30, %v246_v16  ;;  %v291_v43 = vrot.slane %v281_v39, 2 }
  0x55   :  { %v384_v62 = vrot.slane %v383_v60, 1  ;;  %v151_v10 = vadd.f32 %v150_v59, %v149_v61  ;;  %v158_v23 = vadd.f32 %v157_v47, %v156_v34  ;;  %v165_v48 = vadd.f32 %v164_v20, %v163_v51 }
  0x56   :  { %v197_v26 = vmul.f32 0.0625, %v144_v58  ;;  %v323_v35 = vmul.f32 %v913_v36, %v246_v16  ;;  %v312_v54 = vrot.slane %v302_v40, 3  ;;  %v344_v59 = vmul.f32 %v917_v44, %v246_v16 }
  0x57   :  { %v385_v22 = vmax.f32 %v383_v60, %v384_v62  ;;  %v198_v25 = vmul.f32 0.0625, %v151_v10  ;;  %v199_v15 = vmul.f32 0.0625, %v158_v23  ;;  %v200_v27 = vmul.f32 0.0625, %v165_v48 }
  0x58   :  { %v232_v52 = vsel %vm220_vm0, %v197_v26, %v196_v46  ;;  %v1093_v20 = vstv %s1071_s1  ;;  %s765_s1 = smov [#allocation8]  }
  0x59   :  { %v392_v53 = vsub.f32 %v378_v56, %v385_v22  ;;  %v233_v61 = vsel %vm222_vm1, %v198_v25, %v232_v52  ;;  %v270_v56 = vrot.slane %v260_v55, 1  ;;  %s665_s15 = sshll.u32 %s765_s1, 4  ;;  %s666_s15 = int_to_ptr.vmem [resolvable:$true] %s665_s15 }
  0x5a   :  { %v234_v60 = vsel %vm224_vm2, %v199_v15, %v233_v61  ;;  %s732_s16 = scalar_lea.vmem %s666_s15, 4096  ;;  %p737_p0 = scmp.lt.s32.totalorder %s666_s15, %s666_s15 }
  0x5b   :  { %v394_v11 = vmul.f32 1.442695, %v392_v53  ;;  %v235_v34 = vsel %vm226_vm3, %v200_v27, %v234_v60  ;;  %p733_p13 = scmp.ne.s32.totalorder %s666_s15, %s732_s16  ;;  %p738_p1 = scmp.lt.s32.totalorder %s732_s16, %s732_s16 }
  0x5c   :  { %v244_v45 = vsel %vm242_vm6, 0.0, %v235_v34 }
  0x5d   :  { %690 = vpow2.f32 %v394_v11  ;;  %v252_v31 = vmul.f32 %v1092_v50, %v244_v45  ;;  %v259_v38 = vmul.f32 %v885_v49, %v244_v45  ;;  %v280_v51 = vmul.f32 %v895_v57, %v244_v45  ;;  %p739_p2 = por %p738_p1, %p737_p0 }
  0x5e   :  { %v301_v41 = vmul.f32 %v908_v30, %v244_v45  ;;  %v322_v62 = vmul.f32 %v913_v36, %v244_v45  ;;  %v343_v47 = vmul.f32 %v917_v44, %v244_v45  ;;  %v333_v49 = vrot.slane %v323_v35, 4 }
  0x5f   :  { %v254_v58 = vadd.f32 %v252_v31, %v1093_v20  ;;  %v269_v10 = vrot.slane %v259_v38, 1  ;;  %v290_v46 = vrot.slane %v280_v51, 2  ;;  %v364_v57 = vmul.f32 %v927_v21, %v246_v16  ;;  %p740_p3 = pnand %p739_p2, %p733_p13 }
  0x60   :  { %v311_v22 = vrot.slane %v301_v41, 3  ;;  %v332_v48 = vrot.slane %v322_v62, 4  ;;  %v363_v36 = vmul.f32 %v927_v21, %v244_v45  ;;  %v353_v44 = vrot.slane %v344_v59, 5 }
  0x61   :  { %v271_v30 = vsel %vm265_vm7, %v269_v10, %v270_v56  ;;  %v292_v23 = vsel %vm286_vm8, %v290_v46, %v291_v43  ;;  %v352_v53 = vrot.slane %v343_v47, 5  ;;  %v374_v55 = vrot.slane %v364_v57, 6 }
  0x62   :  { %v275_v26 = vadd.f32 %v271_v30, %v254_v58  ;;  %v313_v25 = vsel %vm307_vm9, %v311_v22, %v312_v54  ;;  %v334_v39 = vsel %vm328_vm10, %v332_v48, %v333_v49  ;;  %v373_v52 = vrot.slane %v363_v36, 6 }
  0x63   :  { %v354_v61 = vsel %vm242_vm6, %v352_v53, %v353_v44  ;;  %v764_v54 = vmov 1966171168   ;;  %v422_v62 = vlaneseq }
  0x64   :  { %v296_v15 = vadd.f32 %v292_v23, %v275_v26  ;;  %v375_v34 = vsel %vm369_vm11, %v373_v52, %v374_v55  ;;  %v420_v59 = vunpack.c.l.s4 %v764_v54 }
  0x65   :  { %v423_v10 = vshrl.u32 %v422_v62, 7 }
  0x66   :  { %v317_v16 = vadd.f32 %v313_v25, %v296_v15  ;;  %v421_v58 = vunpack.c.0.s8 %v420_v59 }
  0x67   :  { %v691_v27 = vpop.eup %690  ;;  %v994_v36 = vsub.s32 0, %v423_v10 }
  0x68   :  { %v398_v11 = vrot.slane %v691_v27, 4  ;;  %v338_v60 = vadd.f32 %v334_v39, %v317_v16  ;;  %v991_v30 = vsub.s32 %v421_v58, %v423_v10 }
  0x6a   :  { %v399_v40 = vadd.f32 %v691_v27, %v398_v11  ;;  %v358_v56 = vadd.f32 %v354_v61, %v338_v60 }
  0x6c   :  { %v400_v21 = vrot.slane %v399_v40, 2  ;;  %v379_v35 = vadd.f32 %v375_v34, %v358_v56 }
  0x6e   :  { %v401_v43 = vadd.f32 %v400_v21, %v399_v40  ;;  %v386_v50 = vrot.slane %v379_v35, 4 }
  0x70   :  { %v402_v45 = vrot.slane %v401_v43, 1  ;;  %v387_v38 = vmax.f32 %v379_v35, %v386_v50 }
  0x72   :  { %v403_v31 = vadd.f32 %v402_v45, %v401_v43  ;;  %v388_v51 = vrot.slane %v387_v38, 2 }
  0x74   :  { %692 = vrcp.f32 %v403_v31  ;;  %v389_v41 = vmax.f32 %v387_v38, %v388_v51 }
  0x76   :  { %v390_v47 = vrot.slane %v389_v41, 1 }
  0x78   :  { %v391_v20 = vmax.f32 %v389_v41, %v390_v47 }
  0x7a   :  { %v393_v46 = vsub.f32 %v379_v35, %v391_v20 }
  0x7c   :  { %v396_v49 = vmul.f32 1.442695, %v393_v46 }
  0x7e   :  { %v693_v22 = vpop.eup %692  ;;  %694 = vpow2.f32 %v396_v49 }
  0x7f   :  { %v412_v57 = vmul.f32 16.0, %v693_v22 }
  0x81   :  { %v414_v23 = vmul.f32 %v691_v27, %v412_v57 }
  0x83   :  { %v425_v48 = vrot.slane %v414_v23, %v991_v30  ;;  %v418_v26 = vcombine.high %v414_v23, %v414_v23 }
  0x85   :  { %v441_v44 = vrot.slane %v425_v48, %v991_v30  ;;  %v433_v25 = vcombine.high %v425_v48, %v425_v48  ;;  %v432_v53 = vrot.slane %v418_v26, %v991_v30 }
  0x87   :  { %v519_v15 = vrot.slane %v441_v44, %v994_v36  ;;  %v455_v55 = vrot.slane %v433_v25, %v991_v30  ;;  %v463_v39 = vcombine.high %v441_v44, %v441_v44  ;;  %v448_v52 = vrot.slane %v432_v53, %v991_v30 }
  0x88   :  { %v434_v11 = vcombine.high %v432_v53, %v432_v53  ;;  %v695_v60 = vpop.eup %694 }
  0x89   :  { %v596_v27 = vmul.f32 %v519_v15, %v804_v0  ;;  %v597_v16 = vmul.f32 %v519_v15, %v806_v1  ;;  %v523_v61 = vrot.slane %v455_v55, %v994_v36  ;;  %v527_v40 = vrot.slane %v463_v39, %v994_v36 }
  0x8a   :  { %v465_v34 = vcombine.high %v455_v55, %v455_v55  ;;  %v535_v21 = vrot.slane %v448_v52, %v994_v36  ;;  %v462_v56 = vrot.slane %v434_v11, %v991_v30  ;;  %v464_v43 = vcombine.high %v448_v52, %v448_v52 }
  0x8b   :  { %628 = vst [vmem:[#allocation8] sm:$0xff] %v596_v27  ;;  %629 = vst [vmem:[#allocation8 + $0x8] sm:$0xff] %v597_v16  ;;  %v598_v35 = vmul.f32 %v523_v61, %v808_v2  ;;  %v599_v45 = vmul.f32 %v523_v61, %v810_v3  ;;  %v600_v0 = vmul.f32 %v527_v40, %v812_v4  ;;  %v404_v3 = vrot.slane %v695_v60, 4 }
  0x8c   :  { %v601_v1 = vmul.f32 %v527_v40, %v814_v5  ;;  %v531_v50 = vrot.slane %v465_v34, %v994_v36  ;;  %v604_v31 = vmul.f32 %v535_v21, %v822_v9  ;;  %v605_v38 = vmul.f32 %v535_v21, %v828_v12 }
  0x8d   :  { %v539_v51 = vrot.slane %v462_v56, %v994_v36  ;;  %630 = vst [vmem:[#allocation8 + $0x10] sm:$0xff] %v598_v35  ;;  %631 = vst [vmem:[#allocation8 + $0x18] sm:$0xff] %v599_v45  ;;  %v543_v2 = vrot.slane %v464_v43, %v994_v36  ;;  %v466_v41 = vcombine.high %v462_v56, %v462_v56 }
  0x8e   :  { %632 = vst [vmem:[#allocation8 + $0x20] sm:$0xff] %v600_v0  ;;  %633 = vst [vmem:[#allocation8 + $0x28] sm:$0xff] %v601_v1  ;;  %v602_v4 = vmul.f32 %v531_v50, %v818_v7  ;;  %v603_v5 = vmul.f32 %v531_v50, %v820_v8  ;;  %v405_v47 = vadd.f32 %v695_v60, %v404_v3  ;;  %v1099_v1 = vld [vmem:[#allocation15_spill] sm:$0xff] }
  0x8f   :  { %636 = vst [vmem:[#allocation8 + $0x40] sm:$0xff] %v604_v31  ;;  %637 = vst [vmem:[#allocation8 + $0x48] sm:$0xff] %v605_v38  ;;  %v606_v9 = vmul.f32 %v539_v51, %v830_v13  ;;  %v607_v12 = vmul.f32 %v539_v51, %v832_v14  ;;  %v608_v54 = vmul.f32 %v543_v2, %v836_v17  ;;  %v1100_v38 = vld [vmem:[#allocation16_spill] sm:$0xff] }
  0x90   :  { %v609_v59 = vmul.f32 %v543_v2, %v838_v18  ;;  %v547_v62 = vrot.slane %v466_v41, %v994_v36  ;;  %634 = vst [vmem:[#allocation8 + $0x30] sm:$0xff] %v602_v4  ;;  %635 = vst [vmem:[#allocation8 + $0x38] sm:$0xff] %v603_v5  ;;  %v406_v13 = vrot.slane %v405_v47, 2  ;;  %v1101_v2 = vld [vmem:[#allocation17_spill] sm:$0xff] }
  0x91   :  { %638 = vst [vmem:[#allocation8 + $0x50] sm:$0xff] %v606_v9  ;;  %639 = vst [vmem:[#allocation8 + $0x58] sm:$0xff] %v607_v12 }
  0x92   :  { %640 = vst [vmem:[#allocation8 + $0x60] sm:$0xff] %v608_v54  ;;  %641 = vst [vmem:[#allocation8 + $0x68] sm:$0xff] %v609_v59  ;;  %v610_v7 = vmul.f32 %v547_v62, %v840_v19  ;;  %v611_v8 = vmul.f32 %v547_v62, %v846_v24  ;;  %v407_v14 = vadd.f32 %v406_v13, %v405_v47 }
  0x94   :  { %642 = vst [vmem:[#allocation8 + $0x70] sm:$0xff] %v610_v7  ;;  %643 = vst [vmem:[#allocation8 + $0x78] sm:$0xff] %v611_v8  ;;  %v408_v17 = vrot.slane %v407_v14, 1 }
  0x96   :  { %v409_v20 = vadd.f32 %v408_v17, %v407_v14 }
  0x98   :  { %696 = vrcp.f32 %v409_v20 }
  0xa2   :  { %v697_v18 = vpop.eup %696 }
  0xa3   :  { %v413_v58 = vmul.f32 16.0, %v697_v18 }
  0xa5   :  { %v415_v10 = vmul.f32 %v695_v60, %v413_v58 }
  0xa7   :  { %v474_v46 = vrot.slane %v415_v10, %v991_v30  ;;  %v467_v22 = vcombine.high %v415_v10, %v415_v10 }
  0xa9   :  { %v490_v49 = vrot.slane %v474_v46, %v991_v30  ;;  %v482_v57 = vcombine.high %v474_v46, %v474_v46  ;;  %v481_v19 = vrot.slane %v467_v22, %v991_v30 }
  0xab   :  { %v551_v24 = vrot.slane %v490_v49, %v994_v36  ;;  %v504_v23 = vrot.slane %v482_v57, %v991_v30  ;;  %v512_v48 = vcombine.high %v490_v49, %v490_v49  ;;  %v497_v26 = vrot.slane %v481_v19, %v991_v30 }
  0xac   :  { %v483_v44 = vcombine.high %v481_v19, %v481_v19 }
  0xad   :  { %v612_v25 = vmul.f32 %v551_v24, %v923_v63  ;;  %v613_v53 = vmul.f32 %v551_v24, %v925_v6  ;;  %v555_v15 = vrot.slane %v504_v23, %v994_v36  ;;  %v559_v55 = vrot.slane %v512_v48, %v994_v36 }
  0xae   :  { %v514_v39 = vcombine.high %v504_v23, %v504_v23  ;;  %v567_v52 = vrot.slane %v497_v26, %v994_v36  ;;  %v511_v11 = vrot.slane %v483_v44, %v991_v30  ;;  %v513_v27 = vcombine.high %v497_v26, %v497_v26 }
  0xaf   :  { %644 = vst [vmem:[#allocation8 + $0x80] sm:$0xff] %v612_v25  ;;  %645 = vst [vmem:[#allocation8 + $0x88] sm:$0xff] %v613_v53  ;;  %v614_v16 = vmul.f32 %v555_v15, %v931_v28  ;;  %v615_v61 = vmul.f32 %v555_v15, %v933_v29  ;;  %v616_v63 = vmul.f32 %v559_v55, %v935_v32  ;;  %v1094_v29 = vld [vmem:[#allocation18_spill] sm:$0xff]  ;;  %v1095_v32 = vld [vmem:[#allocation19_spill] sm:$0xff] }
  0xb0   :  { %v617_v6 = vmul.f32 %v559_v55, %v937_v33  ;;  %v563_v40 = vrot.slane %v514_v39, %v994_v36  ;;  %v620_v60 = vmul.f32 %v567_v52, %v946_v42  ;;  %v621_v34 = vmul.f32 %v567_v52, %v948_v37  ;;  %v1096_v33 = vld [vmem:[#allocation12_spill] sm:$0xff]  ;;  %v1097_v42 = vld [vmem:[#allocation13_spill] sm:$0xff]  ;;  %v1098_v37 = vld [vmem:[#allocation14_spill] sm:$0xff] }
  0xb1   :  { %v571_v21 = vrot.slane %v511_v11, %v994_v36  ;;  %646 = vst [vmem:[#allocation8 + $0x90] sm:$0xff] %v614_v16  ;;  %647 = vst [vmem:[#allocation8 + $0x98] sm:$0xff] %v615_v61  ;;  %v575_v28 = vrot.slane %v513_v27, %v994_v36  ;;  %v515_v30 = vcombine.high %v511_v11, %v511_v11 }
  0xb2   :  { %648 = vst [vmem:[#allocation8 + $0xa0] sm:$0xff] %v616_v63  ;;  %649 = vst [vmem:[#allocation8 + $0xa8] sm:$0xff] %v617_v6  ;;  %v618_v56 = vmul.f32 %v563_v40, %v1094_v29  ;;  %v619_v43 = vmul.f32 %v563_v40, %v1095_v32 }
  0xb3   :  { %652 = vst [vmem:[#allocation8 + $0xc0] sm:$0xff] %v620_v60  ;;  %653 = vst [vmem:[#allocation8 + $0xc8] sm:$0xff] %v621_v34  ;;  %v622_v35 = vmul.f32 %v571_v21, %v1096_v33  ;;  %v623_v45 = vmul.f32 %v571_v21, %v1097_v42  ;;  %v624_v0 = vmul.f32 %v575_v28, %v1098_v37 }
  0xb4   :  { %v625_v50 = vmul.f32 %v575_v28, %v1099_v1  ;;  %v579_v31 = vrot.slane %v515_v30, %v994_v36  ;;  %650 = vst [vmem:[#allocation8 + $0xb0] sm:$0xff] %v618_v56  ;;  %651 = vst [vmem:[#allocation8 + $0xb8] sm:$0xff] %v619_v43 }
  0xb5   :  { %654 = vst [vmem:[#allocation8 + $0xd0] sm:$0xff] %v622_v35  ;;  %655 = vst [vmem:[#allocation8 + $0xd8] sm:$0xff] %v623_v45 }
  0xb6   :  { %656 = vst [vmem:[#allocation8 + $0xe0] sm:$0xff] %v624_v0  ;;  %657 = vst [vmem:[#allocation8 + $0xe8] sm:$0xff] %v625_v50  ;;  %v626_v51 = vmul.f32 %v579_v31, %v1100_v38  ;;  %v627_v41 = vmul.f32 %v579_v31, %v1101_v2 }
  0xb8   :  { %658 = vst [vmem:[#allocation8 + $0xf0] sm:$0xff] %v626_v51  ;;  %659 = vst [vmem:[#allocation8 + $0xf8] sm:$0xff] %v627_v41 }
  0xb9   :  { %743 = shalt.err (!%p740_p3)
}
  0xba   :  { %s744_s19 = scalar_lea.hbm %s1073_s3, 4096 }
  0xbb   :  { %p745_p4 = scmp.ne.s32.totalorder %s1073_s3, %s744_s19  ;;  %p748_p5 = scmp.lt.u32.totalorder %s744_s19, %s1073_s3 }
  0xbd   :  { %p750_p6 = pnand %p748_p5, %p745_p4 }
  0xbf   :  { %753 = shalt.err (!%p750_p6)
}
  0xc0   :  { %671 = dma.vmem_to_hbm [thread:$0]  %s666_s15, 4096, %s1073_s3, [#allocation5], %s762_s26, %s762_s26, %s763_s27  }
  0xc1   :  { %758 = dma.done.wait [#allocation5], 4096  }
  0xc2   :  { %759 = vsyncadd [#allocation5], 4294963200 }
  0xc3   :  { %675 = vsyncpa [#allocation4], 1 }
  0xc4   :  { %676 = vsyncpa [#allocation5], 1 }
  0xc5   :  { %677 = vsyncpa [#allocation6], 1 }

</bundles_post_ra>
